<compile_context>
chip_gen: v7x
topology: tpu7x:2x2x1
jax: 0.10.0
libtpu: 0.0.40
codegen_flags: <defaults>
</compile_context>

<pallas_src>
import numpy as np
import jax
import jax.numpy as jnp
from jax.experimental import pallas as pl
from jax.experimental.pallas import tpu as pltpu


def _copy_kernel(x_ref, o_ref):
    # Identity copy of the current lane/sublane-dense tile; the "view" itself
    # is metadata-only and happens outside the kernel.
    o_ref[...] = x_ref[...]


def _choose_slab(total_elems):
    """Factor total element count into a lane-dense (rows, cols) slab."""
    for cols in (1024, 512, 256, 128):
        if total_elems % cols == 0:
            return total_elems // cols, cols
    return None


def _choose_row_tile(rows, cols, dtype_bytes,
                     target_block_bytes=2 << 20, max_block_bytes=4 << 20):
    """Largest row tile that divides `rows`, is a multiple of 8 (sublane
    dense), and keeps the block <= ~4 MiB (safe for v7x double-buffering)."""
    if rows % 8 != 0:
        # Full-extent block is always legal (block dim == array dim).
        return rows
    bytes_per_row = cols * dtype_bytes
    cap = max(8, (max_block_bytes // bytes_per_row) // 8 * 8)
    target = max(8, (target_block_bytes // bytes_per_row) // 8 * 8)
    best = 8
    d = rows // 8
    for t in range(1, d + 1):
        if d % t == 0:
            tile = t * 8
            if tile <= cap:
                best = tile
            if tile >= target:
                break
    return best


def mlp_review_forward(x, output_dim, channels, Dx=1, Dy=1, use_kernel=True):
    """Pallas implementation of MLPReViewModule.forward.

    x: any-rank array with a leading batch dim; trailing element count must
       equal prod(shape_) where shape_ = (output_dim, Dx[, Dy]).
    """
    if channels == 1:
        target_tail = (output_dim, Dx)
    elif channels == 2:
        target_tail = (output_dim, Dx, Dy)
    else:
        raise ValueError("Not implemented.")

    batch = x.shape[0]
    feat = int(np.prod(x.shape[1:]))
    assert feat == int(np.prod(target_tail)), "element count mismatch for view"
    out_shape = (batch, *target_tail)

    total = batch * feat
    slab = _choose_slab(total)

    if not use_kernel or slab is None:
        # Preferred zero-cost path (torch .view is metadata-only), also the
        # fallback when the element count is not 128-aligned (a kernel there
        # would need masked partial stores for no benefit).
        return jnp.reshape(x, out_shape)

    rows, cols = slab
    dtype_bytes = jnp.dtype(x.dtype).itemsize
    row_tile = _choose_row_tile(rows, cols, dtype_bytes)

    # Flatten to a lane/sublane-dense 2-D slab, row-major (same ordering as
    # torch .view on a contiguous tensor).
    x_slab = jnp.reshape(x, (rows, cols))

    out_slab = pl.pallas_call(
        _copy_kernel,
        out_shape=jax.ShapeDtypeStruct((rows, cols), x.dtype),
        grid_spec=pltpu.PrefetchScalarGridSpec(
            num_scalar_prefetch=0,
            grid=(rows // row_tile,),
            in_specs=[pl.BlockSpec((row_tile, cols), lambda i: (i, 0))],
            out_specs=pl.BlockSpec((row_tile, cols), lambda i: (i, 0)),
        ),
        compiler_params=pltpu.CompilerParams(
            dimension_semantics=("parallel",),
        ),
        # Alias input buffer to output: no second HBM allocation, and XLA may
        # drop the copy entirely when the input is dead afterwards.
        input_output_aliases={0: 0},
    )(x_slab)

    # The actual "view": metadata-only reshape to (batch, *shape_).
    return jnp.reshape(out_slab, out_shape)


if __name__ == "__main__":
    # Module config: channels=2 -> shape_ = (output_dim, Dx, Dy)
    output_dim, channels, Dx, Dy = 4, 2, 16, 16

    key = jax.random.PRNGKey(0)
    # Input in NCHW-ish layout (batch, 4, 16, 16); 4*16*16 == output_dim*Dx*Dy.
    x = jax.random.normal(key, (2, 4, 16, 16), dtype=jnp.float32)

    # Host-side reference (torch: x.view(x.shape[0], output_dim, Dx, Dy)),
    # captured before the kernel so buffer aliasing cannot affect it.
    y_ref = np.asarray(x).reshape(x.shape[0], output_dim, Dx, Dy)

    y = mlp_review_forward(x, output_dim, channels, Dx, Dy)
    y = jax.block_until_ready(y)

    assert y.shape == (2, output_dim, Dx, Dy), y.shape
    assert y.dtype == x.dtype
    np.testing.assert_array_equal(np.asarray(y), y_ref)

    print("KERNEL_OK")
</pallas_src>

<mosaic_0001>
module attributes {stable_mosaic.version = 11 : i64} {
  func.func @_copy_kernel(%arg0: i32, %arg1: memref<2x1024xf32, #tpu.memory_space<vmem>>, %arg2: memref<2x1024xf32, #tpu.memory_space<vmem>>) attributes {dimension_semantics = [#tpu.dimension_semantics<parallel>], iteration_bounds = array<i64: 1>, scalar_prefetch = 0 : i64, scratch_operands = 0 : i64, tpu.core_type = #tpu.core_type<tc>, window_params = [{transform_indices = @transform_0, window_bounds = array<i64: 2, 1024>}, {transform_indices = @transform_1, window_bounds = array<i64: 2, 1024>}]} {
    %c0 = arith.constant 0 : index
    %c0_0 = arith.constant 0 : index
    %0 = vector.load %arg1[%c0, %c0_0] : memref<2x1024xf32, #tpu.memory_space<vmem>>, vector<2x1024xf32>
    %c0_1 = arith.constant 0 : index
    %c0_2 = arith.constant 0 : index
    %1 = vector.load %arg2[%c0_1, %c0_2] : memref<2x1024xf32, #tpu.memory_space<vmem>>, vector<2x1024xf32>
    tpu.vector_store %arg2[%c0_1, %c0_2], %0 {strides = array<i32>} : memref<2x1024xf32, #tpu.memory_space<vmem>>, vector<2x1024xf32>,
    return
  }
  func.func @transform_0(%arg0: i32) -> (i32, i32) {
    %c0_i32 = arith.constant 0 : i32
    %c0_i32_0 = arith.constant 0 : i32
    return %arg0, %c0_i32 : i32, i32
  }
  func.func @transform_1(%arg0: i32) -> (i32, i32) {
    %c0_i32 = arith.constant 0 : i32
    %c0_i32_0 = arith.constant 0 : i32
    return %arg0, %c0_i32 : i32, i32
  }
}

</mosaic_0001>

<bundles_post_ra>
// kernel: tpu_custom_call.1
= control target key start
LH: loop header
LB: loop body
LE: loop exit
PB: predicated region body
PF: predicated region fallthrough
CT: control target
= control target key end

     0   :  { %6 = vsyncpa [#allocation3], 0  ;;  %s126_s0 = inlined_call_operand.hbm [shape: f32[2,1024], index: 0, kind: input, shape index: {}, may-alias: {0,1}]   ;;  %s127_s1 = inlined_call_operand.hbm [shape: f32[2,1024], index: 1, kind: output, shape index: {}, may-alias: {0,1}]  }
   0x1   :  { %7 = vsyncpa [#allocation4], 0  ;;  %s90_s6 = smov [#allocation2]   ;;  %s42_s10 = scalar_lea.hbm %s126_s0, 256 }
   0x2   :  { %s14_s7 = sshll.u32 %s90_s6, 4  ;;  %p43_p0 = scmp.ne.s32.totalorder %s126_s0, %s42_s10  ;;  %s15_s7 = int_to_ptr.vmem [resolvable:$true] %s14_s7 }
   0x3   :  { %p46_p1 = scmp.lt.u32.totalorder %s42_s10, %s126_s0 }
   0x5   :  { %p48_p2 = pnand %p46_p1, %p43_p0 }
   0x7   :  { %51 = shalt.err (!%p48_p2)
}
   0x8   :  { %s52_s15 = scalar_lea.vmem %s15_s7, 256  ;;  %p57_p4 = scmp.lt.s32.totalorder %s15_s7, %s15_s7 }
   0x9   :  { %p53_p3 = scmp.ne.s32.totalorder %s15_s7, %s52_s15  ;;  %p58_p5 = scmp.lt.s32.totalorder %s52_s15, %s52_s15 }
   0xb   :  { %p59_p6 = por %p58_p5, %p57_p4 }
   0xd   :  { %p60_p7 = pnand %p59_p6, %p53_p3 }
   0xf   :  { %63 = shalt.err (!%p60_p7)
}
  0x10   :  { %17 = dma.hbm_to_vmem [thread:$0]  %s126_s0, 256, %s15_s7, [#allocation3]  }
  0x11   :  { %86 = dma.done.wait [#allocation3], 256  }
  0x12   :  { %87 = vsyncadd [#allocation3], 4294967040  ;;  %s91_s18 = smov [#allocation5]   ;;  %v21_v0 = vld [vmem:[#allocation2] sm:$0xff]  ;;  %v22_v1 = vld [vmem:[#allocation2 + $0x8] sm:$0xff] }
  0x13   :  { %s31_s19 = sshll.u32 %s91_s18, 4  ;;  %23 = vst [vmem:[#allocation5] sm:$0xff] %v21_v0  ;;  %24 = vst [vmem:[#allocation5 + $0x8] sm:$0xff] %v22_v1  ;;  %s32_s19 = int_to_ptr.vmem [resolvable:$true] %s31_s19 }
  0x14   :  { %s64_s20 = scalar_lea.vmem %s32_s19, 256  ;;  %p69_p9 = scmp.lt.s32.totalorder %s32_s19, %s32_s19 }
  0x15   :  { %p65_p8 = scmp.ne.s32.totalorder %s32_s19, %s64_s20  ;;  %p70_p10 = scmp.lt.s32.totalorder %s64_s20, %s64_s20 }
  0x17   :  { %p71_p11 = por %p70_p10, %p69_p9 }
  0x19   :  { %p72_p12 = pnand %p71_p11, %p65_p8 }
  0x1b   :  { %75 = shalt.err (!%p72_p12)
}
  0x1c   :  { %s76_s0 = scalar_lea.hbm %s127_s1, 256 }
  0x1d   :  { %p77_p13 = scmp.ne.s32.totalorder %s127_s1, %s76_s0  ;;  %p80_p0 = scmp.lt.u32.totalorder %s76_s0, %s127_s1 }
  0x1f   :  { %p82_p1 = pnand %p80_p0, %p77_p13 }
  0x21   :  { %85 = shalt.err (!%p82_p1)
}
  0x22   :  { %34 = dma.vmem_to_hbm [thread:$0]  %s32_s19, 256, %s127_s1, [#allocation4]  }
  0x23   :  { %88 = dma.done.wait [#allocation4], 256  }
  0x24   :  { %89 = vsyncadd [#allocation4], 4294967040 }
  0x25   :  { %38 = vsyncpa [#allocation3], 1 }
  0x26   :  { %39 = vsyncpa [#allocation4], 1 }

</bundles_post_ra>
